<compile_context>
chip_gen: v6e
topology: v6e:2x2x1
jax: 0.10.0
libtpu: 0.0.40
codegen_flags: <defaults>
</compile_context>

<pallas_src>
import jax
import jax.numpy as jnp
import numpy as np
from jax.experimental import pallas as pl
from jax.experimental.pallas import tpu as pltpu


def projector_kernel(x_ref, stats_ref, weff_ref, w1b_ref, b1_ref,
                     w2_ref, b2_ref, w3_ref, out_ref):
    # x_ref     : (TB, S*L)  raw series, trailing dims collapsed (no pad copy)
    # stats_ref : (TB, L)
    # weff_ref  : (S*L, H0)  conv folded into first Linear (circular wrap baked in)
    # w1b_ref   : (L,  H0)   stats half of the first Linear
    # First Linear on concat([conv, stats]) == x @ Weff + stats @ W1b  (two MXU dots
    # into the same f32 accumulator; the stats dot has a tiny contraction dim and is
    # essentially free next to the x dot).
    h = (jnp.dot(x_ref[...], weff_ref[...], preferred_element_type=jnp.float32)
         + jnp.dot(stats_ref[...], w1b_ref[...], preferred_element_type=jnp.float32)
         + b1_ref[...])
    h = jnp.maximum(h, 0.0)                                            # ReLU

    h = jnp.dot(h, w2_ref[...], preferred_element_type=jnp.float32) + b2_ref[...]
    h = jnp.maximum(h, 0.0)                                            # ReLU

    y = jnp.dot(h, w3_ref[...], preferred_element_type=jnp.float32)    # no bias
    out_ref[...] = y.astype(out_ref.dtype)


def prepare_params(params, enc_in):
    """One-time parameter preparation (hoisted out of the per-call hot path).

    Folds the circular Conv1d into the first Linear's conv half and pre-reshapes biases.
    """
    cw, w1, b1, w2, b2, w3 = (params[k] for k in ("cw", "w1", "b1", "w2", "b2", "w3"))
    L = enc_in
    w1a, w1b = w1[:L], w1[L:]                       # split the concat([conv, stats]) matmul
    # PyTorch Conv1d is cross-correlation with circular pad=1:
    #   conv[b, l] = sum_{s,k} cw[s, k] * x[b, s, (l + k - 1) mod L]
    # so   conv @ w1a == x.reshape(B, S*L) @ Weff   with
    #   Weff[s, m, h] = sum_k cw[s, k] * w1a[(m - k + 1) mod L, h]
    weff = sum(cw[:, k][:, None, None] * jnp.roll(w1a, k - 1, axis=0)[None, :, :]
               for k in range(3))                    # (S, L, H0)
    weff = weff.reshape(-1, w1a.shape[1])            # (S*L, H0)
    return dict(weff=weff, w1b=w1b, b1=b1.reshape(1, -1),
                w2=w2, b2=b2.reshape(1, -1), w3=w3)


def projector_forward(x, stats, fused, *, batch_tile=1024):
    B, S, L = x.shape
    K = S * L
    weff, w1b, b1, w2, b2, w3 = (fused[k] for k in ("weff", "w1b", "b1", "w2", "b2", "w3"))
    H0, H1, out_dim = weff.shape[1], w2.shape[1], w3.shape[1]

    x2d = x.reshape(B, K)          # collapse trailing dims only -- no circular-pad HBM copy
    stats2d = stats.reshape(B, L)  # (B, 1, L) -> (B, L)

    # Batch tiling: whole batch in one block when small; otherwise 1024-row tiles
    # (multiple of 8 sublanes -- biggest tile that is still trivially VMEM-safe with
    # double buffering on v7x's 64 MiB VMEM) so the megacore splits the batch axis
    # and the ~0.35 us per-grid-step overhead is amortized over big tiles.
    tb = B if B <= batch_tile else batch_tile
    grid = (pl.cdiv(B, tb),)

    flops = 2 * B * (K * H0 + L * H0 + H0 * H1 + H1 * out_dim)
    bytes_accessed = 4 * (B * K + B * L + B * out_dim
                          + weff.size + w1b.size + b1.size + w2.size + b2.size + w3.size)
    cost = pl.CostEstimate(flops=flops, transcendentals=0, bytes_accessed=bytes_accessed)

    def replicated(a):
        # Constant block index -> weights stay resident in VMEM across grid steps.
        return pl.BlockSpec(a.shape, lambda i: (0,) * a.ndim)

    return pl.pallas_call(
        projector_kernel,
        out_shape=jax.ShapeDtypeStruct((B, out_dim), x.dtype),
        grid=grid,
        in_specs=[
            pl.BlockSpec((tb, K), lambda i: (i, 0)),        # x tile (batch-blocked)
            pl.BlockSpec((tb, L), lambda i: (i, 0)),        # stats tile
            replicated(weff), replicated(w1b), replicated(b1),
            replicated(w2), replicated(b2), replicated(w3),
        ],
        out_specs=pl.BlockSpec((tb, out_dim), lambda i: (i, 0)),
        compiler_params=pltpu.CompilerParams(
            dimension_semantics=("parallel",),               # batch axis -> both TCs on v7x
            vmem_limit_bytes=32 * 1024 * 1024,               # explicit budget, v7x-safe
        ),
        cost_estimate=cost,
    )(x2d, stats2d, weff, w1b, b1, w2, b2, w3)


def projector_ref(x, stats, params):
    """Pure-JAX reference mirroring the PyTorch module exactly (pad + concat path)."""
    cw, w1, b1, w2, b2, w3 = (params[k] for k in ("cw", "w1", "b1", "w2", "b2", "w3"))
    B, S, L = x.shape
    x_pad = jnp.concatenate([x[:, :, -1:], x, x[:, :, :1]], axis=-1)
    conv = sum(jnp.einsum('s,bsl->bl', cw[:, k], x_pad[:, :, k:k + L]) for k in range(3))
    h = jnp.concatenate([conv, stats[:, 0, :]], axis=-1)               # view(B, 2E)
    h = jnp.maximum(h @ w1 + b1, 0.0)
    h = jnp.maximum(h @ w2 + b2, 0.0)
    return h @ w3


if __name__ == "__main__":
    # Small synthetic config consistent with the module's __init__ signature.
    B, enc_in, seq_len = 4, 8, 16
    hidden_dims = [32, 32]
    hidden_layers = 2          # -> Linear(2E,32), ReLU, Linear(32,32), ReLU, Linear(32,out)
    output_dim = 8

    key = jax.random.PRNGKey(0)
    ks = jax.random.split(key, 8)
    x = jax.random.normal(ks[0], (B, seq_len, enc_in), jnp.float32)
    stats = jax.random.normal(ks[1], (B, 1, enc_in), jnp.float32)

    params = dict(
        cw=0.1 * jax.random.normal(ks[2], (seq_len, 3), jnp.float32),  # Conv1d weight (1, seq_len, 3) squeezed
        w1=0.1 * jax.random.normal(ks[3], (2 * enc_in, hidden_dims[0]), jnp.float32),
        b1=0.1 * jax.random.normal(ks[4], (hidden_dims[0],), jnp.float32),
        w2=0.1 * jax.random.normal(ks[5], (hidden_dims[0], hidden_dims[1]), jnp.float32),
        b2=0.1 * jax.random.normal(ks[6], (hidden_dims[1],), jnp.float32),
        w3=0.1 * jax.random.normal(ks[7], (hidden_dims[1], output_dim), jnp.float32),
    )

    fused = prepare_params(params, enc_in)     # one-time conv-fold + bias reshape
    y = projector_forward(x, stats, fused)
    jax.block_until_ready(y)

    y_ref = projector_ref(x, stats, params)
    assert y.shape == (B, output_dim)
    assert np.allclose(np.asarray(y), np.asarray(y_ref), rtol=1e-4, atol=1e-5)
    print("KERNEL_OK")
</pallas_src>

<mosaic_0001>
module attributes {stable_mosaic.version = 11 : i64} {
  func.func @projector_kernel(%arg0: i32, %arg1: memref<4x128xf32, #tpu.memory_space<vmem>>, %arg2: memref<4x8xf32, #tpu.memory_space<vmem>>, %arg3: memref<128x32xf32, #tpu.memory_space<vmem>>, %arg4: memref<8x32xf32, #tpu.memory_space<vmem>>, %arg5: memref<1x32xf32, #tpu.memory_space<vmem>>, %arg6: memref<32x32xf32, #tpu.memory_space<vmem>>, %arg7: memref<1x32xf32, #tpu.memory_space<vmem>>, %arg8: memref<32x8xf32, #tpu.memory_space<vmem>>, %arg9: memref<4x8xf32, #tpu.memory_space<vmem>>) attributes {dimension_semantics = [#tpu.dimension_semantics<parallel>], iteration_bounds = array<i64: 1>, scalar_prefetch = 0 : i64, scratch_operands = 0 : i64, tpu.core_type = #tpu.core_type<tc>, window_params = [{transform_indices = @transform_0, window_bounds = array<i64: 4, 128>}, {transform_indices = @transform_1, window_bounds = array<i64: 4, 8>}, {pipeline_mode = #tpu.pipeline_mode<synchronous>, transform_indices = @transform_2, window_bounds = array<i64: 128, 32>}, {pipeline_mode = #tpu.pipeline_mode<synchronous>, transform_indices = @transform_3, window_bounds = array<i64: 8, 32>}, {pipeline_mode = #tpu.pipeline_mode<synchronous>, transform_indices = @transform_4, window_bounds = array<i64: 1, 32>}, {pipeline_mode = #tpu.pipeline_mode<synchronous>, transform_indices = @transform_5, window_bounds = array<i64: 32, 32>}, {pipeline_mode = #tpu.pipeline_mode<synchronous>, transform_indices = @transform_6, window_bounds = array<i64: 1, 32>}, {pipeline_mode = #tpu.pipeline_mode<synchronous>, transform_indices = @transform_7, window_bounds = array<i64: 32, 8>}, {transform_indices = @transform_8, window_bounds = array<i64: 4, 8>}]} {
    %c0 = arith.constant 0 : index
    %c0_0 = arith.constant 0 : index
    %0 = vector.load %arg1[%c0, %c0_0] : memref<4x128xf32, #tpu.memory_space<vmem>>, vector<4x128xf32>
    %c0_1 = arith.constant 0 : index
    %c0_2 = arith.constant 0 : index
    %1 = vector.load %arg3[%c0_1, %c0_2] : memref<128x32xf32, #tpu.memory_space<vmem>>, vector<128x32xf32>
    %cst = arith.constant dense<0.000000e+00> : vector<4x32xf32>
    %2 = tpu.matmul %0, %1, %cst {dimension_numbers = #tpu.dot_dimension_numbers<[1], [0], [0], [1], [0, 0, 1, 1], [], []>} : vector<4x128xf32>, vector<128x32xf32>, vector<4x32xf32> -> vector<4x32xf32>
    %c0_3 = arith.constant 0 : index
    %c0_4 = arith.constant 0 : index
    %3 = vector.load %arg2[%c0_3, %c0_4] : memref<4x8xf32, #tpu.memory_space<vmem>>, vector<4x8xf32>
    %c0_5 = arith.constant 0 : index
    %c0_6 = arith.constant 0 : index
    %4 = vector.load %arg4[%c0_5, %c0_6] : memref<8x32xf32, #tpu.memory_space<vmem>>, vector<8x32xf32>
    %cst_7 = arith.constant dense<0.000000e+00> : vector<4x32xf32>
    %5 = tpu.matmul %3, %4, %cst_7 {dimension_numbers = #tpu.dot_dimension_numbers<[1], [0], [0], [1], [0, 0, 1, 1], [], []>} : vector<4x8xf32>, vector<8x32xf32>, vector<4x32xf32> -> vector<4x32xf32>
    %6 = arith.addf %2, %5 : vector<4x32xf32>
    %c0_8 = arith.constant 0 : index
    %c0_9 = arith.constant 0 : index
    %7 = vector.load %arg5[%c0_8, %c0_9] : memref<1x32xf32, #tpu.memory_space<vmem>>, vector<1x32xf32>
    %8 = vector.broadcast %7 : vector<1x32xf32> to vector<4x32xf32>
    %9 = arith.addf %6, %8 : vector<4x32xf32>
    %cst_10 = arith.constant 0.000000e+00 : f32
    %10 = vector.broadcast %cst_10 : f32 to vector<4x32xf32>
    %11 = arith.maximumf %9, %10 : vector<4x32xf32>
    %c0_11 = arith.constant 0 : index
    %c0_12 = arith.constant 0 : index
    %12 = vector.load %arg6[%c0_11, %c0_12] : memref<32x32xf32, #tpu.memory_space<vmem>>, vector<32x32xf32>
    %cst_13 = arith.constant dense<0.000000e+00> : vector<4x32xf32>
    %13 = tpu.matmul %11, %12, %cst_13 {dimension_numbers = #tpu.dot_dimension_numbers<[1], [0], [0], [1], [0, 0, 1, 1], [], []>} : vector<4x32xf32>, vector<32x32xf32>, vector<4x32xf32> -> vector<4x32xf32>
    %c0_14 = arith.constant 0 : index
    %c0_15 = arith.constant 0 : index
    %14 = vector.load %arg7[%c0_14, %c0_15] : memref<1x32xf32, #tpu.memory_space<vmem>>, vector<1x32xf32>
    %15 = vector.broadcast %14 : vector<1x32xf32> to vector<4x32xf32>
    %16 = arith.addf %13, %15 : vector<4x32xf32>
    %cst_16 = arith.constant 0.000000e+00 : f32
    %17 = vector.broadcast %cst_16 : f32 to vector<4x32xf32>
    %18 = arith.maximumf %16, %17 : vector<4x32xf32>
    %c0_17 = arith.constant 0 : index
    %c0_18 = arith.constant 0 : index
    %19 = vector.load %arg8[%c0_17, %c0_18] : memref<32x8xf32, #tpu.memory_space<vmem>>, vector<32x8xf32>
    %cst_19 = arith.constant dense<0.000000e+00> : vector<4x8xf32>
    %20 = tpu.matmul %18, %19, %cst_19 {dimension_numbers = #tpu.dot_dimension_numbers<[1], [0], [0], [1], [0, 0, 1, 1], [], []>} : vector<4x32xf32>, vector<32x8xf32>, vector<4x8xf32> -> vector<4x8xf32>
    %c0_20 = arith.constant 0 : index
    %c0_21 = arith.constant 0 : index
    %21 = vector.load %arg9[%c0_20, %c0_21] : memref<4x8xf32, #tpu.memory_space<vmem>>, vector<4x8xf32>
    tpu.vector_store %arg9[%c0_20, %c0_21], %20 {strides = array<i32>} : memref<4x8xf32, #tpu.memory_space<vmem>>, vector<4x8xf32>,
    return
  }
  func.func @transform_0(%arg0: i32) -> (i32, i32) {
    %c0_i32 = arith.constant 0 : i32
    %c0_i32_0 = arith.constant 0 : i32
    return %arg0, %c0_i32 : i32, i32
  }
  func.func @transform_1(%arg0: i32) -> (i32, i32) {
    %c0_i32 = arith.constant 0 : i32
    %c0_i32_0 = arith.constant 0 : i32
    return %arg0, %c0_i32 : i32, i32
  }
  func.func @transform_2(%arg0: i32) -> (i32, i32) {
    %c0_i32 = arith.constant 0 : i32
    %c0_i32_0 = arith.constant 0 : i32
    %c0_i32_1 = arith.constant 0 : i32
    return %c0_i32, %c0_i32_0 : i32, i32
  }
  func.func @transform_3(%arg0: i32) -> (i32, i32) {
    %c0_i32 = arith.constant 0 : i32
    %c0_i32_0 = arith.constant 0 : i32
    %c0_i32_1 = arith.constant 0 : i32
    return %c0_i32, %c0_i32_0 : i32, i32
  }
  func.func @transform_4(%arg0: i32) -> (i32, i32) {
    %c0_i32 = arith.constant 0 : i32
    %c0_i32_0 = arith.constant 0 : i32
    %c0_i32_1 = arith.constant 0 : i32
    return %c0_i32, %c0_i32_0 : i32, i32
  }
  func.func @transform_5(%arg0: i32) -> (i32, i32) {
    %c0_i32 = arith.constant 0 : i32
    %c0_i32_0 = arith.constant 0 : i32
    %c0_i32_1 = arith.constant 0 : i32
    return %c0_i32, %c0_i32_0 : i32, i32
  }
  func.func @transform_6(%arg0: i32) -> (i32, i32) {
    %c0_i32 = arith.constant 0 : i32
    %c0_i32_0 = arith.constant 0 : i32
    %c0_i32_1 = arith.constant 0 : i32
    return %c0_i32, %c0_i32_0 : i32, i32
  }
  func.func @transform_7(%arg0: i32) -> (i32, i32) {
    %c0_i32 = arith.constant 0 : i32
    %c0_i32_0 = arith.constant 0 : i32
    %c0_i32_1 = arith.constant 0 : i32
    return %c0_i32, %c0_i32_0 : i32, i32
  }
  func.func @transform_8(%arg0: i32) -> (i32, i32) {
    %c0_i32 = arith.constant 0 : i32
    %c0_i32_0 = arith.constant 0 : i32
    return %arg0, %c0_i32 : i32, i32
  }
}

</mosaic_0001>

<bundles_post_ra>
// kernel: tpu_custom_call.1
= control target key start
LH: loop header
LB: loop body
LE: loop exit
PB: predicated region body
PF: predicated region fallthrough
CT: control target
= control target key end

     0   :  { %v502_v1 = vmov 0.0   ;;  %vm503_vm0 = vmmov 0   ;;  %vm49_vm1 = vcmask 64512   ;;  %s675_s0 = inlined_call_operand.vmem [shape: f32[4,128], index: 0, kind: input, shape index: {}]   ;;  %s676_s1 = inlined_call_operand.vmem [shape: f32[4,8], index: 1, kind: input, shape index: {}]   ;;  %s677_s2 = inlined_call_operand.vmem [shape: f32[128,32], index: 2, kind: input, shape index: {}]   ;;  %s678_s3 = inlined_call_operand.vmem [shape: f32[8,32], index: 3, kind: input, shape index: {}]   ;;  %s679_s4 = inlined_call_operand.vmem [shape: f32[1,32], index: 4, kind: input, shape index: {}]   ;;  %s680_s5 = inlined_call_operand.vmem [shape: f32[32,32], index: 5, kind: input, shape index: {}]   ;;  %s681_s6 = inlined_call_operand.vmem [shape: f32[1,32], index: 6, kind: input, shape index: {}]   ;;  %s682_s7 = inlined_call_operand.vmem [shape: f32[32,8], index: 7, kind: input, shape index: {}]   ;;  %s683_s8 = inlined_call_operand.hbm [shape: f32[4,8], index: 8, kind: output, shape index: {}]  }
   0x1   :  { %v46_v0 = vld [vmem:[%s677_s2 + $0x78] sm:$0xff]  ;;  %420 = vmatprep.subr.mxu1 %v502_v1  ;;  %v45_v2 = vld [vmem:[%s677_s2 + $0x70] sm:$0xff]  ;;  %415 = vmatprep.subr.mxu0 %v502_v1  ;;  %v44_v3 = vld [vmem:[%s677_s2 + $0x68] sm:$0xff] }
   0x2   :  { %421 = vmatpush3.msra.mxu1 %v46_v0  ;;  %417 = vmatprep.mubr.msk.f32.mxu0 %vm503_vm0, %v502_v1  ;;  %v48_v4 = vld [vmem:[%s678_s3] sm:$0xff] }
   0x3   :  { %422 = vmatprep.subr.mxu1 %v502_v1  ;;  %452 = vmatprep.mubr.msk.f32.mxu1 %vm503_vm0, %v502_v1  ;;  %v43_v5 = vld [vmem:[%s677_s2 + $0x60] sm:$0xff] }
   0x4   :  { %423 = vmatpush3.msra.mxu1 %v45_v2  ;;  %416 = vmatpush3.msra.mxu0 %v48_v4  ;;  %v47_v6 = vld [vmem:[%s676_s1] sm:$0xf] }
   0x5   :  { %424 = vmatprep.subr.mxu1 %v502_v1  ;;  %418 = vmatmul.mubr.msk.f32.vlgmr.msra.gmra.mxu0 %vm49_vm1, %v47_v6 }
   0x6   :  { %425 = vmatpush3.msra.mxu1 %v44_v3 }
   0x7   :  { %13 = vsyncpa [#allocation3], 0  ;;  %426 = vmatprep.subr.mxu1 %v502_v1  ;;  %v42_v7 = vld [vmem:[%s677_s2 + $0x58] sm:$0xff]  ;;  %455 = vmatprep.subr.mxu0 %v502_v1  ;;  %v41_v8 = vld [vmem:[%s677_s2 + $0x50] sm:$0xff]  ;;  %vm213_vm2 = vcmask 261120   ;;  %s504_s11 = smov [#allocation2]  }
   0x8   :  { %427 = vmatpush3.msra.mxu1 %v43_v5  ;;  %463 = vmatprep.mubr.msk.f32.mxu0 %vm503_vm0, %v502_v1  ;;  %v40_v9 = vld [vmem:[%s677_s2 + $0x48] sm:$0xff]  ;;  %v39_v10 = vld [vmem:[%s677_s2 + $0x40] sm:$0xff]  ;;  %v38_v11 = vld [vmem:[%s677_s2 + $0x38] sm:$0xff]  ;;  %s373_s12 = sshll.u32 %s504_s11, 4  ;;  %vm365_vm3 = vcmask 60416   ;;  %s374_s12 = int_to_ptr.vmem [resolvable:$true] %s373_s12 }
   0x9   :  { %428 = vmatprep.subr.mxu1 %v502_v1  ;;  %v37_v12 = vld [vmem:[%s677_s2 + $0x30] sm:$0xff]  ;;  %v36_v13 = vld [vmem:[%s677_s2 + $0x28] sm:$0xff]  ;;  %v35_v14 = vld [vmem:[%s677_s2 + $0x20] sm:$0xff]  ;;  %s480_s13 = scalar_lea.vmem %s374_s12, 64  ;;  %p485_p1 = scmp.lt.s32.totalorder %s374_s12, %s374_s12 }
   0xa   :  { %429 = vmatpush3.msra.mxu1 %v42_v7  ;;  %v34_v15 = vld [vmem:[%s677_s2 + $0x18] sm:$0xff]  ;;  %v33_v16 = vld [vmem:[%s677_s2 + $0x10] sm:$0xff]  ;;  %v32_v17 = vld [vmem:[%s677_s2 + $0x8] sm:$0xff]  ;;  %p481_p0 = scmp.ne.s32.totalorder %s374_s12, %s480_s13  ;;  %p486_p2 = scmp.lt.s32.totalorder %s480_s13, %s480_s13 }
   0xb   :  { %430 = vmatprep.subr.mxu1 %v502_v1  ;;  %v31_v18 = vld [vmem:[%s677_s2] sm:$0xff]  ;;  %v205_v20 = vld [vmem:[%s680_s5 + $0x18] sm:$0xff]  ;;  %v204_v21 = vld [vmem:[%s680_s5 + $0x10] sm:$0xff] }
   0xc   :  { %431 = vmatpush3.msra.mxu1 %v41_v8  ;;  %v30_v19 = vld [vmem:[%s675_s0] sm:$0xf]  ;;  %456 = vmatpush3.msra.mxu0 %v205_v20  ;;  %v203_v22 = vld [vmem:[%s680_s5 + $0x8] sm:$0xff]  ;;  %v291_v32 = vld [vmem:[%s682_s7 + $0x18] sm:$0xff]  ;;  %p487_p3 = por %p486_p2, %p485_p1 }
   0xd   :  { %432 = vmatprep.subr.mxu1 %v502_v1  ;;  %457 = vmatprep.subr.mxu0 %v502_v1  ;;  %v202_v23 = vld [vmem:[%s680_s5] sm:$0xff]  ;;  %v290_v33 = vld [vmem:[%s682_s7 + $0x10] sm:$0xff]  ;;  %v289_v34 = vld [vmem:[%s682_s7 + $0x8] sm:$0xff] }
   0xe   :  { %433 = vmatpush3.msra.mxu1 %v40_v9  ;;  %458 = vmatpush3.msra.mxu0 %v204_v21  ;;  %v382_v27 = vld [vmem:[%s679_s4] ss:$0 sm:$0xff]  ;;  %p488_p4 = pnand %p487_p3, %p481_p0 }
   0xf   :  { %434 = vmatprep.subr.mxu1 %v502_v1  ;;  %459 = vmatprep.subr.mxu0 %v502_v1  ;;  %v288_v35 = vld [vmem:[%s682_s7] sm:$0xff] }
  0x10   :  { %435 = vmatpush3.msra.mxu1 %v39_v10  ;;  %460 = vmatpush3.msra.mxu0 %v203_v22  ;;  %v383_v36 = vld [vmem:[%s681_s6] ss:$0 sm:$0xff] }
  0x11   :  { %436 = vmatprep.subr.mxu1 %v502_v1  ;;  %461 = vmatprep.subr.mxu0 %v502_v1 }
  0x12   :  { %437 = vmatpush3.msra.mxu1 %v38_v11  ;;  %462 = vmatpush3.msra.mxu0 %v202_v23 }
  0x13   :  { %438 = vmatprep.subr.mxu1 %v502_v1  ;;  %466 = vmatprep.subr.mxu0 %v502_v1 }
  0x14   :  { %439 = vmatpush3.msra.mxu1 %v37_v12 }
  0x15   :  { %440 = vmatprep.subr.mxu1 %v502_v1 }
  0x16   :  { %441 = vmatpush3.msra.mxu1 %v36_v13 }
  0x17   :  { %442 = vmatprep.subr.mxu1 %v502_v1 }
  0x18   :  { %443 = vmatpush3.msra.mxu1 %v35_v14 }
  0x19   :  { %444 = vmatprep.subr.mxu1 %v502_v1 }
  0x1a   :  { %445 = vmatpush3.msra.mxu1 %v34_v15 }
  0x1b   :  { %446 = vmatprep.subr.mxu1 %v502_v1 }
  0x1c   :  { %447 = vmatpush3.msra.mxu1 %v33_v16 }
  0x1d   :  { %448 = vmatprep.subr.mxu1 %v502_v1 }
  0x1e   :  { %449 = vmatpush3.msra.mxu1 %v32_v17 }
  0x1f   :  { %450 = vmatprep.subr.mxu1 %v502_v1 }
  0x20   :  { %451 = vmatpush3.msra.mxu1 %v31_v18 }
  0x21   :  { %453 = vmatmul.mubr.f32.vlgmr.msra.gmra.mxu1 %v30_v19 }
  0xc5   :  { %v119_v24 = vpop.f32.mrf.mxu0 }
  0xc7   :  { %v419_v25 = vpop.f32.mrf.mxu0 }
  0xe1   :  { %v189_v26 = vpop.f32.mrf.mxu1 }
  0xe2   :  { %v190_v28 = vadd.f32 %v189_v26, %v119_v24 }
  0xe3   :  { %v454_v29 = vpop.f32.mrf.mxu1 }
  0xe4   :  { %v200_v30 = vadd.f32 %v382_v27, %v190_v28 }
  0xe6   :  { %v201_v31 = vmax.f32 %v200_v30, 0.0 }
  0xe8   :  { %464 = vmatmul.mubr.msk.f32.vlgmr.msra.gmra.mxu0 %vm213_vm2, %v201_v31 }
  0xe9   :  { %467 = vmatpush3.msra.mxu0 %v291_v32  ;;  %474 = vmatprep.mubr.msk.f32.mxu0 %vm503_vm0, %v502_v1 }
  0xea   :  { %468 = vmatprep.subr.mxu0 %v502_v1 }
  0xeb   :  { %469 = vmatpush3.msra.mxu0 %v290_v33 }
  0xec   :  { %470 = vmatprep.subr.mxu0 %v502_v1 }
  0xed   :  { %471 = vmatpush3.msra.mxu0 %v289_v34 }
  0xee   :  { %472 = vmatprep.subr.mxu0 %v502_v1 }
  0xef   :  { %473 = vmatpush3.msra.mxu0 %v288_v35 }
 0x1a8   :  { %v283_v37 = vpop.f32.mrf.mxu0 }
 0x1a9   :  { %v284_v38 = vadd.f32 %v383_v36, %v283_v37 }
 0x1aa   :  { %v465_v39 = vpop.f32.mrf.mxu0 }
 0x1ab   :  { %v287_v40 = vmax.f32 %v284_v38, 0.0 }
 0x1ad   :  { %475 = vmatmul.mubr.msk.f32.vlgmr.msra.gmra.mxu0 %vm213_vm2, %v287_v40 }
 0x26d   :  { %v361_v41 = vpop.f32.mrf.mxu0 }
 0x26e   :  { %366 = vst.msk [vmem:[#allocation2] sm:$0xf] %vm365_vm3, %v361_v41 }
 0x26f   :  { %v476_v42 = vpop.f32.mrf.mxu0 }
 0x270   :  { %491 = shalt.err (!%p488_p4)
}
 0x271   :  { %376 = dma.vmem_to_hbm [thread:$0]  %s374_s12, 64, %s683_s8, [#allocation3]  }
 0x272   :  { %500 = dma.done.wait [#allocation3], 64  }
 0x273   :  { %501 = vsyncadd [#allocation3], 4294967232 }
 0x274   :  { %380 = vsyncpa [#allocation3], 1 }

</bundles_post_ra>
